<compile_context>
chip_gen: v7x
topology: tpu7x:2x2x1
jax: 0.10.0
libtpu: 0.0.40
codegen_flags: <defaults>
</compile_context>

<pallas_src>
import functools

import jax
import jax.numpy as jnp
from jax.experimental import pallas as pl
from jax.experimental.pallas import tpu as pltpu

LN_EPS = 1e-5  # torch.nn.LayerNorm default


def _normalize(x, eps=LN_EPS):
    # torch LayerNorm statistics: mean + biased variance over the last dim.
    mu = jnp.mean(x, axis=-1, keepdims=True)
    var = jnp.mean((x - mu) * (x - mu), axis=-1, keepdims=True)
    return (x - mu) * jax.lax.rsqrt(var + eps)


def _lstm_cell_kernel(xhc_ref, wih_ref, whh_ref, ln_ref, hy_ref, cy_ref,
                      *, input_size: int, hidden_size: int):
    I, H = input_size, hidden_size

    x = xhc_ref[:, :I]
    hx = xhc_ref[:, I:I + H]
    cx = xhc_ref[:, I + H:I + 2 * H].astype(jnp.float32)

    # Two MXU matmuls against the un-padded transposed weights; f32 accumulate.
    ig_raw = jnp.dot(x, wih_ref[...], preferred_element_type=jnp.float32)   # [B, 4H]
    hg_raw = jnp.dot(hx, whh_ref[...], preferred_element_type=jnp.float32)  # [B, 4H]

    gi = ln_ref[0:1, :].astype(jnp.float32)
    bi = ln_ref[1:2, :].astype(jnp.float32)
    gh = ln_ref[2:3, :].astype(jnp.float32)
    bh = ln_ref[3:4, :].astype(jnp.float32)
    gc = ln_ref[4:5, :H].astype(jnp.float32)
    bc = ln_ref[5:6, :H].astype(jnp.float32)

    # igates + hgates, each layer-normed over the full 4H dim.
    gates = (_normalize(ig_raw) * gi + bi) + (_normalize(hg_raw) * gh + bh)

    # Gate order was permuted in the wrapper to [i, f, o, g]: sigmoid covers a
    # single contiguous 3H chunk, tanh a single H chunk (no duplicated EUP work).
    sig = jax.nn.sigmoid(gates[:, :3 * H])
    cellgate = jnp.tanh(gates[:, 3 * H:4 * H])
    ingate = sig[:, 0:H]
    forgetgate = sig[:, H:2 * H]
    outgate = sig[:, 2 * H:3 * H]

    cy = _normalize(forgetgate * cx + ingate * cellgate) * gc + bc
    hy = outgate * jnp.tanh(cy)

    hy_ref[...] = hy.astype(hy_ref.dtype)
    cy_ref[...] = cy.astype(cy_ref.dtype)   # kept f32: recurrent state precision


def layernorm_lstm_cell(x, state, params):
    """Pallas forward of LayerNormLSTMCell.

    x:      [B, input_size]
    state:  (hx [B, H], cx [B, H])
    params: dict with weight_ih [4H, I], weight_hh [4H, H],
            ln_i/ln_h gamma,beta [4H], ln_c gamma,beta [H]
    Returns (hy, (hy, cy)) like the PyTorch module (cy kept in f32).
    """
    hx, cx = state
    B, I = x.shape
    H = hx.shape[1]
    G = 4 * H

    # --- wrapper-side glue (hoist out of any sequence loop) -----------------
    # Permute gate packing [i, f, g, o] -> [i, f, o, g]. LayerNorm over the
    # full 4H axis is permutation-equivariant when gamma/beta are permuted
    # identically, so this is numerically exact.
    perm = jnp.concatenate([
        jnp.arange(0, H), jnp.arange(H, 2 * H),
        jnp.arange(3 * H, 4 * H), jnp.arange(2 * H, 3 * H),
    ])

    wih_t = params["weight_ih"][perm].T          # [I, 4H]
    whh_t = params["weight_hh"][perm].T          # [H, 4H]

    pad_c = lambda v: jnp.pad(v, (0, G - H))
    ln_all = jnp.stack([
        params["ln_i_gamma"][perm], params["ln_i_beta"][perm],
        params["ln_h_gamma"][perm], params["ln_h_beta"][perm],
        pad_c(params["ln_c_gamma"]), pad_c(params["ln_c_beta"]),
    ], axis=0).astype(jnp.float32)               # [6, 4H]

    xhc = jnp.concatenate(
        [x, hx, cx.astype(x.dtype)], axis=-1)    # [B, I + 2H]
    # ------------------------------------------------------------------------

    full = lambda shape: pl.BlockSpec(shape, lambda: (0,) * len(shape),
                                      memory_space=pltpu.VMEM)

    # Explicit VMEM budget: resident bytes (x2 headroom for Pallas buffering),
    # clamped to stay inside the smallest per-core VMEM (v7x: 64 MiB).
    itemsize = lambda a: a.size * a.dtype.itemsize
    resident = (itemsize(xhc) + itemsize(wih_t) + itemsize(whh_t)
                + itemsize(ln_all) + 2 * B * H * 4)
    vmem_limit = int(min(max(2 * resident + (4 << 20), 8 << 20), 64 << 20))

    hy, cy = pl.pallas_call(
        functools.partial(_lstm_cell_kernel, input_size=I, hidden_size=H),
        out_shape=(jax.ShapeDtypeStruct((B, H), x.dtype),
                   jax.ShapeDtypeStruct((B, H), jnp.float32)),
        grid=(),  # single program; everything is VMEM-resident at these sizes
        in_specs=[
            full((B, I + 2 * H)),   # [x | hx | cx]
            full((I, G)),           # Wih^T
            full((H, G)),           # Whh^T
            full((6, G)),           # packed LN params (gates + padded cell)
        ],
        out_specs=(full((B, H)), full((B, H))),
        compiler_params=pltpu.CompilerParams(vmem_limit_bytes=vmem_limit),
    )(xhc, wih_t, whh_t, ln_all)

    return hy, (hy, cy)


def _reference(x, state, params):
    """Pure-JAX reference mirroring the PyTorch forward exactly."""
    hx, cx = state

    def ln(v, g, b):
        return _normalize(v) * g + b

    ig = ln(x @ params["weight_ih"].T, params["ln_i_gamma"], params["ln_i_beta"])
    hg = ln(hx @ params["weight_hh"].T, params["ln_h_gamma"], params["ln_h_beta"])
    gates = ig + hg
    H = hx.shape[1]
    i, f, g, o = (gates[:, k * H:(k + 1) * H] for k in range(4))
    i, f, g, o = jax.nn.sigmoid(i), jax.nn.sigmoid(f), jnp.tanh(g), jax.nn.sigmoid(o)
    cy = ln(f * cx + i * g, params["ln_c_gamma"], params["ln_c_beta"])
    hy = o * jnp.tanh(cy)
    return hy, (hy, cy)


if __name__ == "__main__":
    B, INPUT_SIZE, HIDDEN_SIZE = 8, 32, 32
    G = 4 * HIDDEN_SIZE

    key = jax.random.PRNGKey(0)
    k_x, k_h, k_c, k_wih, k_whh = jax.random.split(key, 5)

    x = jax.random.normal(k_x, (B, INPUT_SIZE), dtype=jnp.float32)
    hx = jax.random.normal(k_h, (B, HIDDEN_SIZE), dtype=jnp.float32)
    cx = jax.random.normal(k_c, (B, HIDDEN_SIZE), dtype=jnp.float32)

    # deterministic "torch.randn"-style weights; LayerNorm init: gamma=1, beta=0
    params = {
        "weight_ih": jax.random.normal(k_wih, (G, INPUT_SIZE), dtype=jnp.float32),
        "weight_hh": jax.random.normal(k_whh, (G, HIDDEN_SIZE), dtype=jnp.float32),
        "ln_i_gamma": jnp.ones((G,), jnp.float32),
        "ln_i_beta": jnp.zeros((G,), jnp.float32),
        "ln_h_gamma": jnp.ones((G,), jnp.float32),
        "ln_h_beta": jnp.zeros((G,), jnp.float32),
        "ln_c_gamma": jnp.ones((HIDDEN_SIZE,), jnp.float32),
        "ln_c_beta": jnp.zeros((HIDDEN_SIZE,), jnp.float32),
    }

    hy, (hy2, cy) = layernorm_lstm_cell(x, (hx, cx), params)
    jax.block_until_ready((hy, cy))

    hy_ref, (_, cy_ref) = _reference(x, (hx, cx), params)
    assert jnp.allclose(hy, hy_ref, atol=1e-5, rtol=1e-5), "hy mismatch"
    assert jnp.allclose(cy, cy_ref, atol=1e-5, rtol=1e-5), "cy mismatch"

    print("KERNEL_OK")
</pallas_src>

<mosaic_0001>
module attributes {stable_mosaic.version = 11 : i64} {
  func.func @_lstm_cell_kernel(%arg0: memref<8x96xf32, #tpu.memory_space<vmem>>, %arg1: memref<32x128xf32, #tpu.memory_space<vmem>>, %arg2: memref<32x128xf32, #tpu.memory_space<vmem>>, %arg3: memref<6x128xf32, #tpu.memory_space<vmem>>, %arg4: memref<8x32xf32, #tpu.memory_space<vmem>>, %arg5: memref<8x32xf32, #tpu.memory_space<vmem>>) attributes {dimension_semantics = [], scalar_prefetch = 0 : i64, scratch_operands = 0 : i64, tpu.core_type = #tpu.core_type<tc>} {
    %c0 = arith.constant 0 : index
    %c0_0 = arith.constant 0 : index
    %0 = vector.load %arg0[%c0, %c0_0] : memref<8x96xf32, #tpu.memory_space<vmem>>, vector<8x32xf32>
    %c0_1 = arith.constant 0 : index
    %c32 = arith.constant 32 : index
    %1 = vector.load %arg0[%c0_1, %c32] : memref<8x96xf32, #tpu.memory_space<vmem>>, vector<8x32xf32>
    %c0_2 = arith.constant 0 : index
    %c64 = arith.constant 64 : index
    %2 = vector.load %arg0[%c0_2, %c64] : memref<8x96xf32, #tpu.memory_space<vmem>>, vector<8x32xf32>
    %c0_3 = arith.constant 0 : index
    %c0_4 = arith.constant 0 : index
    %3 = vector.load %arg1[%c0_3, %c0_4] : memref<32x128xf32, #tpu.memory_space<vmem>>, vector<32x128xf32>
    %cst = arith.constant dense<0.000000e+00> : vector<8x128xf32>
    %4 = tpu.matmul %0, %3, %cst {dimension_numbers = #tpu.dot_dimension_numbers<[1], [0], [0], [1], [0, 0, 1, 1], [], []>} : vector<8x32xf32>, vector<32x128xf32>, vector<8x128xf32> -> vector<8x128xf32>
    %c0_5 = arith.constant 0 : index
    %c0_6 = arith.constant 0 : index
    %5 = vector.load %arg2[%c0_5, %c0_6] : memref<32x128xf32, #tpu.memory_space<vmem>>, vector<32x128xf32>
    %cst_7 = arith.constant dense<0.000000e+00> : vector<8x128xf32>
    %6 = tpu.matmul %1, %5, %cst_7 {dimension_numbers = #tpu.dot_dimension_numbers<[1], [0], [0], [1], [0, 0, 1, 1], [], []>} : vector<8x32xf32>, vector<32x128xf32>, vector<8x128xf32> -> vector<8x128xf32>
    %c0_8 = arith.constant 0 : index
    %c0_9 = arith.constant 0 : index
    %7 = vector.load %arg3[%c0_8, %c0_9] : memref<6x128xf32, #tpu.memory_space<vmem>>, vector<1x128xf32>
    %c1 = arith.constant 1 : index
    %c0_10 = arith.constant 0 : index
    %8 = vector.load %arg3[%c1, %c0_10] : memref<6x128xf32, #tpu.memory_space<vmem>>, vector<1x128xf32>
    %c2 = arith.constant 2 : index
    %c0_11 = arith.constant 0 : index
    %9 = vector.load %arg3[%c2, %c0_11] : memref<6x128xf32, #tpu.memory_space<vmem>>, vector<1x128xf32>
    %c3 = arith.constant 3 : index
    %c0_12 = arith.constant 0 : index
    %10 = vector.load %arg3[%c3, %c0_12] : memref<6x128xf32, #tpu.memory_space<vmem>>, vector<1x128xf32>
    %c4 = arith.constant 4 : index
    %c0_13 = arith.constant 0 : index
    %11 = vector.load %arg3[%c4, %c0_13] : memref<6x128xf32, #tpu.memory_space<vmem>>, vector<1x32xf32>
    %c5 = arith.constant 5 : index
    %c0_14 = arith.constant 0 : index
    %12 = vector.load %arg3[%c5, %c0_14] : memref<6x128xf32, #tpu.memory_space<vmem>>, vector<1x32xf32>
    %cst_15 = arith.constant dense<0.000000e+00> : vector<8xf32>
    %13 = vector.multi_reduction <add>, %4, %cst_15 [1] : vector<8x128xf32> to vector<8xf32>
    %14 = vector.shape_cast %13 : vector<8xf32> to vector<8x1xf32>
    %cst_16 = arith.constant 1.280000e+02 : f32
    %15 = vector.broadcast %cst_16 : f32 to vector<8x1xf32>
    %16 = arith.divf %14, %15 : vector<8x1xf32>
    %17 = vector.broadcast %16 : vector<8x1xf32> to vector<8x128xf32>
    %18 = arith.subf %4, %17 : vector<8x128xf32>
    %19 = vector.broadcast %16 : vector<8x1xf32> to vector<8x128xf32>
    %20 = arith.subf %4, %19 : vector<8x128xf32>
    %21 = arith.mulf %18, %20 : vector<8x128xf32>
    %cst_17 = arith.constant dense<0.000000e+00> : vector<8xf32>
    %22 = vector.multi_reduction <add>, %21, %cst_17 [1] : vector<8x128xf32> to vector<8xf32>
    %23 = vector.shape_cast %22 : vector<8xf32> to vector<8x1xf32>
    %cst_18 = arith.constant 1.280000e+02 : f32
    %24 = vector.broadcast %cst_18 : f32 to vector<8x1xf32>
    %25 = arith.divf %23, %24 : vector<8x1xf32>
    %26 = vector.broadcast %16 : vector<8x1xf32> to vector<8x128xf32>
    %27 = arith.subf %4, %26 : vector<8x128xf32>
    %cst_19 = arith.constant 9.99999974E-6 : f32
    %28 = vector.broadcast %cst_19 : f32 to vector<8x1xf32>
    %29 = arith.addf %25, %28 : vector<8x1xf32>
    %30 = math.rsqrt %29 : vector<8x1xf32>
    %31 = vector.broadcast %30 : vector<8x1xf32> to vector<8x128xf32>
    %32 = arith.mulf %27, %31 : vector<8x128xf32>
    %33 = vector.broadcast %7 : vector<1x128xf32> to vector<8x128xf32>
    %34 = arith.mulf %32, %33 : vector<8x128xf32>
    %35 = vector.broadcast %8 : vector<1x128xf32> to vector<8x128xf32>
    %36 = arith.addf %34, %35 : vector<8x128xf32>
    %cst_20 = arith.constant dense<0.000000e+00> : vector<8xf32>
    %37 = vector.multi_reduction <add>, %6, %cst_20 [1] : vector<8x128xf32> to vector<8xf32>
    %38 = vector.shape_cast %37 : vector<8xf32> to vector<8x1xf32>
    %cst_21 = arith.constant 1.280000e+02 : f32
    %39 = vector.broadcast %cst_21 : f32 to vector<8x1xf32>
    %40 = arith.divf %38, %39 : vector<8x1xf32>
    %41 = vector.broadcast %40 : vector<8x1xf32> to vector<8x128xf32>
    %42 = arith.subf %6, %41 : vector<8x128xf32>
    %43 = vector.broadcast %40 : vector<8x1xf32> to vector<8x128xf32>
    %44 = arith.subf %6, %43 : vector<8x128xf32>
    %45 = arith.mulf %42, %44 : vector<8x128xf32>
    %cst_22 = arith.constant dense<0.000000e+00> : vector<8xf32>
    %46 = vector.multi_reduction <add>, %45, %cst_22 [1] : vector<8x128xf32> to vector<8xf32>
    %47 = vector.shape_cast %46 : vector<8xf32> to vector<8x1xf32>
    %cst_23 = arith.constant 1.280000e+02 : f32
    %48 = vector.broadcast %cst_23 : f32 to vector<8x1xf32>
    %49 = arith.divf %47, %48 : vector<8x1xf32>
    %50 = vector.broadcast %40 : vector<8x1xf32> to vector<8x128xf32>
    %51 = arith.subf %6, %50 : vector<8x128xf32>
    %cst_24 = arith.constant 9.99999974E-6 : f32
    %52 = vector.broadcast %cst_24 : f32 to vector<8x1xf32>
    %53 = arith.addf %49, %52 : vector<8x1xf32>
    %54 = math.rsqrt %53 : vector<8x1xf32>
    %55 = vector.broadcast %54 : vector<8x1xf32> to vector<8x128xf32>
    %56 = arith.mulf %51, %55 : vector<8x128xf32>
    %57 = vector.broadcast %9 : vector<1x128xf32> to vector<8x128xf32>
    %58 = arith.mulf %56, %57 : vector<8x128xf32>
    %59 = vector.broadcast %10 : vector<1x128xf32> to vector<8x128xf32>
    %60 = arith.addf %58, %59 : vector<8x128xf32>
    %61 = arith.addf %36, %60 : vector<8x128xf32>
    %62 = vector.extract_strided_slice %61 {offsets = [0, 0], sizes = [8, 96], strides = [1, 1]} : vector<8x128xf32> to vector<8x96xf32>
    %63 = arith.negf %62 : vector<8x96xf32>
    %64 = math.exp %63 : vector<8x96xf32>
    %cst_25 = arith.constant 1.000000e+00 : f32
    %65 = vector.broadcast %cst_25 : f32 to vector<8x96xf32>
    %66 = arith.addf %65, %64 : vector<8x96xf32>
    %67 = arith.divf %65, %66 : vector<8x96xf32>
    %68 = vector.extract_strided_slice %61 {offsets = [0, 96], sizes = [8, 32], strides = [1, 1]} : vector<8x128xf32> to vector<8x32xf32>
    %69 = math.tanh %68 : vector<8x32xf32>
    %70 = vector.extract_strided_slice %67 {offsets = [0, 0], sizes = [8, 32], strides = [1, 1]} : vector<8x96xf32> to vector<8x32xf32>
    %71 = vector.extract_strided_slice %67 {offsets = [0, 32], sizes = [8, 32], strides = [1, 1]} : vector<8x96xf32> to vector<8x32xf32>
    %72 = vector.extract_strided_slice %67 {offsets = [0, 64], sizes = [8, 32], strides = [1, 1]} : vector<8x96xf32> to vector<8x32xf32>
    %73 = arith.mulf %71, %2 : vector<8x32xf32>
    %74 = arith.mulf %70, %69 : vector<8x32xf32>
    %75 = arith.addf %73, %74 : vector<8x32xf32>
    %cst_26 = arith.constant dense<0.000000e+00> : vector<8xf32>
    %76 = vector.multi_reduction <add>, %75, %cst_26 [1] : vector<8x32xf32> to vector<8xf32>
    %77 = vector.shape_cast %76 : vector<8xf32> to vector<8x1xf32>
    %cst_27 = arith.constant 3.200000e+01 : f32
    %78 = vector.broadcast %cst_27 : f32 to vector<8x1xf32>
    %79 = arith.divf %77, %78 : vector<8x1xf32>
    %80 = vector.broadcast %79 : vector<8x1xf32> to vector<8x32xf32>
    %81 = arith.subf %75, %80 : vector<8x32xf32>
    %82 = vector.broadcast %79 : vector<8x1xf32> to vector<8x32xf32>
    %83 = arith.subf %75, %82 : vector<8x32xf32>
    %84 = arith.mulf %81, %83 : vector<8x32xf32>
    %cst_28 = arith.constant dense<0.000000e+00> : vector<8xf32>
    %85 = vector.multi_reduction <add>, %84, %cst_28 [1] : vector<8x32xf32> to vector<8xf32>
    %86 = vector.shape_cast %85 : vector<8xf32> to vector<8x1xf32>
    %cst_29 = arith.constant 3.200000e+01 : f32
    %87 = vector.broadcast %cst_29 : f32 to vector<8x1xf32>
    %88 = arith.divf %86, %87 : vector<8x1xf32>
    %89 = vector.broadcast %79 : vector<8x1xf32> to vector<8x32xf32>
    %90 = arith.subf %75, %89 : vector<8x32xf32>
    %cst_30 = arith.constant 9.99999974E-6 : f32
    %91 = vector.broadcast %cst_30 : f32 to vector<8x1xf32>
    %92 = arith.addf %88, %91 : vector<8x1xf32>
    %93 = math.rsqrt %92 : vector<8x1xf32>
    %94 = vector.broadcast %93 : vector<8x1xf32> to vector<8x32xf32>
    %95 = arith.mulf %90, %94 : vector<8x32xf32>
    %96 = vector.broadcast %11 : vector<1x32xf32> to vector<8x32xf32>
    %97 = arith.mulf %95, %96 : vector<8x32xf32>
    %98 = vector.broadcast %12 : vector<1x32xf32> to vector<8x32xf32>
    %99 = arith.addf %97, %98 : vector<8x32xf32>
    %100 = math.tanh %99 : vector<8x32xf32>
    %101 = arith.mulf %72, %100 : vector<8x32xf32>
    %c0_31 = arith.constant 0 : index
    %c0_32 = arith.constant 0 : index
    %102 = vector.load %arg4[%c0_31, %c0_32] : memref<8x32xf32, #tpu.memory_space<vmem>>, vector<8x32xf32>
    tpu.vector_store %arg4[%c0_31, %c0_32], %101 {strides = array<i32>} : memref<8x32xf32, #tpu.memory_space<vmem>>, vector<8x32xf32>,
    %c0_33 = arith.constant 0 : index
    %c0_34 = arith.constant 0 : index
    %103 = vector.load %arg5[%c0_33, %c0_34] : memref<8x32xf32, #tpu.memory_space<vmem>>, vector<8x32xf32>
    tpu.vector_store %arg5[%c0_33, %c0_34], %99 {strides = array<i32>} : memref<8x32xf32, #tpu.memory_space<vmem>>, vector<8x32xf32>,
    return
  }
}

</mosaic_0001>

<bundles_post_ra>
// kernel: tpu_custom_call.1
= control target key start
LH: loop header
LB: loop body
LE: loop exit
PB: predicated region body
PF: predicated region fallthrough
CT: control target
= control target key end

     0   :  { %11 = vsyncpa [#allocation3], 0  ;;  %s712_s0 = inlined_call_operand.hbm [shape: f32[8,96], index: 0, kind: input, shape index: {}]   ;;  %s713_s1 = inlined_call_operand.hbm [shape: f32[32,128], index: 1, kind: input, shape index: {}]   ;;  %s714_s2 = inlined_call_operand.hbm [shape: f32[32,128], index: 2, kind: input, shape index: {}]   ;;  %s715_s3 = inlined_call_operand.vmem [shape: f32[6,128], index: 3, kind: input, shape index: {}]   ;;  %s716_s4 = inlined_call_operand.hbm [shape: f32[8,32], index: 4, kind: output, shape index: {0}]   ;;  %s717_s5 = inlined_call_operand.hbm [shape: f32[8,32], index: 5, kind: output, shape index: {1}]  }
   0x1   :  { %12 = vsyncpa [#allocation6], 0 }
   0x2   :  { %13 = vsyncpa [#allocation4], 0 }
   0x3   :  { %14 = vsyncpa [#allocation10], 0  ;;  %s570_s18 = smov [#allocation5]   ;;  %s452_s22 = scalar_lea.hbm %s713_s1, 512 }
   0x4   :  { %s30_s19 = sshll.u32 %s570_s18, 4  ;;  %p453_p0 = scmp.ne.s32.totalorder %s713_s1, %s452_s22  ;;  %s31_s19 = int_to_ptr.vmem [resolvable:$true] %s30_s19 }
   0x5   :  { %p456_p1 = scmp.lt.u32.totalorder %s452_s22, %s713_s1 }
   0x7   :  { %p458_p2 = pnand %p456_p1, %p453_p0 }
   0x9   :  { %461 = shalt.err (!%p458_p2)
}
   0xa   :  { %s462_s27 = scalar_lea.vmem %s31_s19, 512  ;;  %p467_p4 = scmp.lt.s32.totalorder %s31_s19, %s31_s19 }
   0xb   :  { %p463_p3 = scmp.ne.s32.totalorder %s31_s19, %s462_s27  ;;  %p468_p5 = scmp.lt.s32.totalorder %s462_s27, %s462_s27 }
   0xd   :  { %p469_p6 = por %p468_p5, %p467_p4 }
   0xf   :  { %p470_p7 = pnand %p469_p6, %p463_p3 }
  0x11   :  { %473 = shalt.err (!%p470_p7)
}
  0x12   :  { %s571_s28 = smov 128   ;;  %s572_s29 = smov 8  }
  0x13   :  { %36 = dma.hbm_to_vmem [thread:$0]  %s713_s1, 512, %s31_s19, [#allocation6], %s571_s28, %s571_s28, %s572_s29  }
  0x14   :  { %s573_s7 = smov [#allocation2]   ;;  %s574_s9 = smov [#allocation7]  }
  0x15   :  { %s21_s8 = sshll.u32 %s573_s7, 4  ;;  %s42_s10 = sshll.u32 %s574_s9, 4  ;;  %s22_s8 = int_to_ptr.vmem [resolvable:$true] %s21_s8  ;;  %s43_s10 = int_to_ptr.vmem [resolvable:$true] %s42_s10 }
  0x16   :  { %s474_s13 = scalar_lea.hbm %s712_s0, 128 }
  0x17   :  { %p475_p8 = scmp.ne.s32.totalorder %s712_s0, %s474_s13  ;;  %p478_p9 = scmp.lt.u32.totalorder %s474_s13, %s712_s0 }
  0x19   :  { %p480_p10 = pnand %p478_p9, %p475_p8 }
  0x1b   :  { %483 = shalt.err (!%p480_p10)
}
  0x1c   :  { %s484_s1 = scalar_lea.vmem %s22_s8, 128  ;;  %p489_p12 = scmp.lt.s32.totalorder %s22_s8, %s22_s8 }
  0x1d   :  { %p485_p11 = scmp.ne.s32.totalorder %s22_s8, %s484_s1  ;;  %p490_p13 = scmp.lt.s32.totalorder %s484_s1, %s484_s1 }
  0x1f   :  { %p491_p0 = por %p490_p13, %p489_p12 }
  0x21   :  { %p492_p1 = pnand %p491_p0, %p485_p11 }
  0x23   :  { %495 = shalt.err (!%p492_p1)
}
  0x24   :  { %24 = dma.hbm_to_vmem [thread:$0]  %s712_s0, 128, %s22_s8, [#allocation3]  }
  0x25   :  { %s496_s22 = scalar_lea.hbm %s714_s2, 512 }
  0x26   :  { %p497_p2 = scmp.ne.s32.totalorder %s714_s2, %s496_s22  ;;  %p500_p3 = scmp.lt.u32.totalorder %s496_s22, %s714_s2 }
  0x28   :  { %p502_p4 = pnand %p500_p3, %p497_p2 }
  0x2a   :  { %505 = shalt.err (!%p502_p4)
}
  0x2b   :  { %s506_s27 = scalar_lea.vmem %s43_s10, 512  ;;  %p511_p6 = scmp.lt.s32.totalorder %s43_s10, %s43_s10 }
  0x2c   :  { %p507_p5 = scmp.ne.s32.totalorder %s43_s10, %s506_s27  ;;  %p512_p7 = scmp.lt.s32.totalorder %s506_s27, %s506_s27 }
  0x2e   :  { %p513_p8 = por %p512_p7, %p511_p6 }
  0x30   :  { %p514_p9 = pnand %p513_p8, %p507_p5 }
  0x32   :  { %517 = shalt.err (!%p514_p9)
}
  0x33   :  { %48 = dma.hbm_to_vmem [thread:$0]  %s714_s2, 512, %s43_s10, [#allocation6], %s571_s28, %s571_s28, %s572_s29  }
  0x34   :  { %562 = dma.done.wait [#allocation3], 128  }
  0x35   :  { %563 = vsyncadd [#allocation3], 4294967168 }
  0x36   :  { %564 = dma.done.wait [#allocation6], 1024  }
  0x37   :  { %565 = vsyncadd [#allocation6], 4294966272  ;;  %v575_v0 = vmov 0.0|0.0   ;;  %vm576_vm0 = vmmov 0   ;;  %v577_v1 = vmov 0.0   ;;  %v60_v2 = vld [vmem:[#allocation2] sm:$0xff] }
  0x38   :  { %413 = vmatprep.subr.bf16.mxu0 %v575_v0  ;;  %399 = vmatprep.mubr.msk.f32.mxu0 %vm576_vm0, %v577_v1  ;;  %v61_v3 = vld [vmem:[#allocation5] sm:$0xff]  ;;  %v62_v4 = vld [vmem:[#allocation5 + $0x8] sm:$0xff]  ;;  %s578_s6 = smov 96   ;;  %v63_v6 = vld [vmem:[#allocation5 + $0x10] sm:$0xff]  ;;  %vm65_vm1 = vcmask 261120   ;;  %s579_s12 = smov 32  }
  0x39   :  { %419 = vmatprep.subr.bf16.mxu1 %v575_v0  ;;  %410 = vmatprep.mubr.msk.f32.mxu1 %vm576_vm0, %v577_v1  ;;  %v414_v5 = vpack.c.bf16 %v62_v4, %v61_v3  ;;  %v64_v7 = vld [vmem:[#allocation5 + $0x18] sm:$0xff]  ;;  %v139_v8 = vld [vmem:[#allocation7] sm:$0xff]  ;;  %v140_v9 = vld [vmem:[#allocation7 + $0x8] sm:$0xff]  ;;  %s580_s17 = smov 64   ;;  %s582_s18 = smov [#allocation9]  }
  0x3a   :  { %143 = vrot.lane.b32.xlu0 %v60_v2, %s578_s6  ;;  %v141_v10 = vld [vmem:[#allocation7 + $0x10] sm:$0xff]  ;;  %v142_v11 = vld [vmem:[#allocation7 + $0x18] sm:$0xff]  ;;  %v417_v12 = vpack.c.bf16 %v64_v7, %v63_v6  ;;  %v420_v13 = vpack.c.bf16 %v140_v9, %v139_v8  ;;  %s358_s19 = sshll.u32 %s582_s18, 4  ;;  %s359_s19 = int_to_ptr.vmem [resolvable:$true] %s358_s19 }
  0x3b   :  { %415 = vmatpush3.bf16.msra.mxu0 %v414_v5  ;;  %v423_v14 = vpack.c.bf16 %v142_v11, %v141_v10  ;;  %v374_v36 = vld [vmem:[%s715_s3] ss:$0 sm:$0xff]  ;;  %v376_v38 = vld [vmem:[%s715_s3 + $0x2] ss:$0 sm:$0xff]  ;;  %v375_v41 = vld [vmem:[%s715_s3 + $0x1] ss:$0 sm:$0xff] }
  0x3c   :  { %416 = vmatprep.subr.bf16.mxu0 %v575_v0  ;;  %421 = vmatpush3.bf16.msra.mxu1 %v420_v13  ;;  %v377_v42 = vld [vmem:[%s715_s3 + $0x3] ss:$0 sm:$0xff]  ;;  %v379_v63 = vld [vmem:[%s715_s3 + $0x4] ss:$0 sm:$0xff] }
  0x3d   :  { %422 = vmatprep.subr.bf16.mxu1 %v575_v0 }
  0x3f   :  { %418 = vmatpush3.bf16.msra.mxu0 %v417_v12 }
  0x40   :  { %424 = vmatpush3.bf16.msra.mxu1 %v423_v14 }
  0x42   :  { %400 = vmatmul.mubr.msk.f32.vlgmr.msra.gmra.mrb[0].mxu0 %vm65_vm1, %v60_v2  ;;  %v380_v2 = vld [vmem:[%s715_s3 + $0x5] ss:$0 sm:$0xff]  ;;  %s581_s3 = smov [#allocation8]  }
  0x43   :  { %s348_s1 = sshll.u32 %s581_s3, 4  ;;  %s349_s1 = int_to_ptr.vmem [resolvable:$true] %s348_s1 }
  0x44   :  { %s518_s20 = scalar_lea.vmem %s349_s1, 128  ;;  %p523_p11 = scmp.lt.s32.totalorder %s349_s1, %s349_s1 }
  0x45   :  { %p519_p10 = scmp.ne.s32.totalorder %s349_s1, %s518_s20  ;;  %p524_p12 = scmp.lt.s32.totalorder %s518_s20, %s518_s20 }
  0x47   :  { %p525_p13 = por %p524_p12, %p523_p11 }
  0x49   :  { %p526_p0 = pnand %p525_p13, %p519_p10 }
  0xac   :  { %v144_v15 = vpop.permute.xlu0 %143 }
  0xad   :  { %411 = vmatmul.mubr.msk.f32.vlgmr.msra.gmra.mrb[0].mxu1 %vm65_vm1, %v144_v15 }
 0x115   :  { %v135_v16 = vpop.f32.mrb[0].mxu0 }
 0x116   :  { %223 = vadd.xlane.f32.xlu0 %v135_v16  ;;  %v401_v17 = vpop.f32.mrb[1].mxu0 }
 0x180   :  { %v213_v18 = vpop.f32.mrb[0].mxu1 }
 0x181   :  { %245 = vadd.xlane.f32.xlu1 %v213_v18  ;;  %v412_v19 = vpop.f32.mrb[1].mxu1 }
 0x1a3   :  { %v224_v20 = vpop.xlane.xlu0 %223 }
 0x1a4   :  { %v226_v21 = vmul.f32 0.0078125, %v224_v20 }
 0x1a6   :  { %v227_v22 = vsub.f32 %v135_v16, %v226_v21 }
 0x1a8   :  { %v228_v23 = vmul.f32 %v227_v22, %v227_v22 }
 0x1aa   :  { %229 = vadd.xlane.f32.xlu1 %v228_v23 }
 0x20e   :  { %v246_v24 = vpop.xlane.xlu1 %245 }
 0x20f   :  { %v247_v25 = vmul.f32 0.0078125, %v246_v24 }
 0x211   :  { %v248_v26 = vsub.f32 %v213_v18, %v247_v25 }
 0x213   :  { %v249_v27 = vmul.f32 %v248_v26, %v248_v26 }
 0x215   :  { %250 = vadd.xlane.f32.xlu1 %v249_v27 }
 0x237   :  { %v230_v28 = vpop.xlane.xlu1 %229 }
 0x238   :  { %v231_v29 = vmul.f32 0.0078125, %v230_v28 }
 0x23a   :  { %v232_v30 = vadd.f32 1e-05, %v231_v29 }
 0x23c   :  { %438 = vrsqrt.f32 %v232_v30 }
 0x246   :  { %v439_v34 = vpop.eup %438 }
 0x247   :  { %v234_v35 = vmul.f32 %v439_v34, %v227_v22 }
 0x249   :  { %v239_v39 = vmul.f32 %v374_v36, %v234_v35 }
 0x24b   :  { %v244_v44 = vadd.f32 %v375_v41, %v239_v39 }
 0x2a2   :  { %v251_v31 = vpop.xlane.xlu1 %250 }
 0x2a3   :  { %v252_v32 = vmul.f32 0.0078125, %v251_v31 }
 0x2a5   :  { %v253_v33 = vadd.f32 1e-05, %v252_v32 }
 0x2a7   :  { %440 = vrsqrt.f32 %v253_v33 }
 0x2b1   :  { %v441_v37 = vpop.eup %440 }
 0x2b2   :  { %v255_v40 = vmul.f32 %v441_v37, %v248_v26 }
 0x2b4   :  { %v260_v43 = vmul.f32 %v376_v38, %v255_v40 }
 0x2b6   :  { %v265_v45 = vadd.f32 %v377_v42, %v260_v43 }
 0x2b8   :  { %v266_v46 = vadd.f32 %v265_v45, %v244_v44 }
 0x2ba   :  { %442 = vtanh.f32 %v266_v46  ;;  %v378_v48 = vmul.f32 -1.442695, %v266_v46 }
 0x2bc   :  { %444 = vpow2.f32 %v378_v48 }
 0x2c4   :  { %v443_v47 = vpop.eup %442 }
 0x2c5   :  { %277 = vrot.lane.b32.xlu1 %v443_v47, %s579_s12 }
 0x2c6   :  { %v445_v49 = vpop.eup %444 }
 0x2c7   :  { %v270_v50 = vadd.f32 1.0, %v445_v49 }
 0x2c9   :  { %446 = vrcp.f32 %v270_v50 }
 0x2d3   :  { %v447_v51 = vpop.eup %446 }
 0x2d4   :  { %v275_v54 = vmul.f32 %v447_v51, %v144_v15 }
 0x337   :  { %v278_v52 = vpop.permute.xlu1 %277 }
 0x338   :  { %v280_v53 = vmul.f32 %v447_v51, %v278_v52 }
 0x33a   :  { %282 = vrot.lane.b32.xlu1 %v280_v53, %s579_s12 }
 0x3ac   :  { %v283_v55 = vpop.permute.xlu1 %282 }
 0x3ad   :  { %v285_v56 = vadd.f32 %v283_v55, %v275_v54 }
 0x3af   :  { %287 = vrot.lane.b32.xlu1 %v285_v56, %s578_s6 }
 0x421   :  { %v288_v57 = vpop.permute.xlu1 %287 }
 0x422   :  { %v290_v58 = vsel %vm65_vm1, %v288_v57, 0.0 }
 0x423   :  { %291 = vadd.xlane.f32.xlu0 %v290_v58 }
 0x4b0   :  { %v292_v59 = vpop.xlane.xlu0 %291 }
 0x4b1   :  { %v294_v60 = vmul.f32 0.03125, %v292_v59 }
 0x4b3   :  { %v295_v61 = vsub.f32 %v285_v56, %v294_v60 }
 0x4b5   :  { %v296_v62 = vmul.f32 %v295_v61, %v295_v61 }
 0x4b7   :  { %298 = vrot.lane.b32.xlu1 %v296_v62, %s578_s6 }
 0x4bb   :  { %313 = vrot.lane.b32.xlu1 %v379_v63, %s579_s12 }
 0x529   :  { %v299_v0 = vpop.permute.xlu1 %298 }
 0x52a   :  { %v301_v1 = vsel %vm65_vm1, %v299_v0, 0.0 }
 0x52b   :  { %302 = vadd.xlane.f32.xlu0 %v301_v1 }
 0x52d   :  { %v314_v7 = vpop.permute.xlu1 %313 }
 0x541   :  { %322 = vrot.lane.b32.xlu0 %v380_v2, %s579_s12 }
 0x5b8   :  { %v303_v3 = vpop.xlane.xlu0 %302 }
 0x5b9   :  { %v304_v4 = vmul.f32 0.03125, %v303_v3 }
 0x5bb   :  { %v305_v5 = vadd.f32 1e-05, %v304_v4 }
 0x5bc   :  { %v323_v9 = vpop.permute.xlu0 %322 }
 0x5bd   :  { %448 = vrsqrt.f32 %v305_v5 }
 0x5c7   :  { %v449_v6 = vpop.eup %448 }
 0x5c8   :  { %v307_v8 = vmul.f32 %v449_v6, %v295_v61 }
 0x5ca   :  { %v316_v10 = vmul.f32 %v314_v7, %v307_v8 }
 0x5cc   :  { %v325_v11 = vadd.f32 %v323_v9, %v316_v10 }
 0x5ce   :  { %450 = vtanh.f32 %v325_v11 }
 0x5d8   :  { %v451_v12 = vpop.eup %450 }
 0x5d9   :  { %328 = vrot.lane.b32.xlu1 %v451_v12, %s579_s12 }
 0x64b   :  { %v329_v13 = vpop.permute.xlu1 %328 }
 0x64c   :  { %v331_v14 = vmul.f32 %v447_v51, %v329_v13 }
 0x64e   :  { %333 = vrot.lane.b32.xlu1 %v331_v14, %s580_s17 }
 0x652   :  { %338 = vrot.lane.b32.xlu1 %v325_v11, %s578_s6 }
 0x6c0   :  { %v334_v15 = vpop.permute.xlu1 %333 }
 0x6c1   :  { %336 = vst.msk [vmem:[#allocation8] sm:$0xff] %vm65_vm1, %v334_v15 }
 0x6c2   :  { %529 = shalt.err (!%p526_p0)
}
 0x6c3   :  { %s530_s23 = scalar_lea.hbm %s716_s4, 128 }
 0x6c4   :  { %p531_p1 = scmp.ne.s32.totalorder %s716_s4, %s530_s23  ;;  %p534_p2 = scmp.lt.u32.totalorder %s530_s23, %s716_s4 }
 0x6c6   :  { %p536_p3 = pnand %p534_p2, %p531_p1 }
 0x6c8   :  { %539 = shalt.err (!%p536_p3)
}
 0x6c9   :  { %351 = dma.vmem_to_hbm [thread:$0]  %s349_s1, 128, %s716_s4, [#allocation4]   ;;  %v339_v16 = vpop.permute.xlu1 %338 }
 0x6ca   :  { %341 = vst.msk [vmem:[#allocation9] sm:$0xff] %vm65_vm1, %v339_v16  ;;  %s540_s6 = scalar_lea.vmem %s359_s19, 128  ;;  %p545_p5 = scmp.lt.s32.totalorder %s359_s19, %s359_s19 }
 0x6cb   :  { %p541_p4 = scmp.ne.s32.totalorder %s359_s19, %s540_s6  ;;  %p546_p6 = scmp.lt.s32.totalorder %s540_s6, %s540_s6 }
 0x6cd   :  { %p547_p7 = por %p546_p6, %p545_p5 }
 0x6cf   :  { %p548_p8 = pnand %p547_p7, %p541_p4 }
 0x6d1   :  { %551 = shalt.err (!%p548_p8)
}
 0x6d2   :  { %s552_s29 = scalar_lea.hbm %s717_s5, 128 }
 0x6d3   :  { %p553_p9 = scmp.ne.s32.totalorder %s717_s5, %s552_s29  ;;  %p556_p10 = scmp.lt.u32.totalorder %s552_s29, %s717_s5 }
 0x6d5   :  { %p558_p11 = pnand %p556_p10, %p553_p9 }
 0x6d7   :  { %561 = shalt.err (!%p558_p11)
}
 0x6d8   :  { %361 = dma.vmem_to_hbm [thread:$0]  %s359_s19, 128, %s717_s5, [#allocation10]  }
 0x6d9   :  { %566 = dma.done.wait [#allocation4], 128  }
 0x6da   :  { %567 = vsyncadd [#allocation4], 4294967168 }
 0x6db   :  { %568 = dma.done.wait [#allocation10], 128  }
 0x6dc   :  { %569 = vsyncadd [#allocation10], 4294967168 }
 0x6dd   :  { %368 = vsyncpa [#allocation3], 1 }
 0x6de   :  { %369 = vsyncpa [#allocation6], 1 }
 0x6df   :  { %370 = vsyncpa [#allocation4], 1 }
 0x6e0   :  { %371 = vsyncpa [#allocation10], 1 }

</bundles_post_ra>
